<compile_context>
chip_gen: v5e
topology: v5e:2x2
jax: 0.10.0
libtpu: 0.0.40
codegen_flags: <defaults>
</compile_context>

<pallas_src>
import functools

import jax
import jax.numpy as jnp
from jax.experimental import pallas as pl
from jax.experimental.pallas import tpu as pltpu


def _total_loss_kernel(q, cas_ref, label_ref, flow_ref, rgb_ref, gt_ref,
                       out_ref, stack_ref):
    B = cas_ref.shape[0]
    inv_b = 1.0 / B                                    # trace-time constant

    # ---------------- CrossEntropyLoss ----------------
    # -mean_b sum_c (label / rowsum + 1e-10) * log_softmax(logits)
    logits = cas_ref[...].astype(jnp.float32)          # [B, C]
    lab = label_ref[...].astype(jnp.float32)           # [B, C]

    inv_rowsum = pl.reciprocal(jnp.sum(lab, axis=1, keepdims=True))   # exact
    lab = lab * inv_rowsum + 1e-10                     # matches torch: label/sum + 1e-10

    m = jnp.max(logits, axis=1, keepdims=True)
    shifted = logits - m
    lse = jnp.log(jnp.sum(jnp.exp(shifted), axis=1, keepdims=True))
    log_sm = shifted - lse                             # log_softmax along dim=1

    # keepdims reductions keep everything in vector land (no scalar extraction).
    base = -inv_b * jnp.sum(jnp.sum(lab * log_sm, axis=1, keepdims=True),
                            axis=0, keepdims=True)     # (1, 1)

    # ------------- GeneralizedCE (shared gt terms hoisted) -------------
    lb = gt_ref[...].astype(jnp.float32)               # [B, T] (BlockSpec-squeezed)
    one_minus_lb = 1.0 - lb
    pos = jnp.sum(lb, axis=1, keepdims=True) + 1e-07            # [B, 1]
    neg = jnp.sum(one_minus_lb, axis=1, keepdims=True) + 1e-07  # [B, 1]
    w_pos = lb * pl.reciprocal(pos)                    # 1/pos folded into weight (exact)
    w_neg = one_minus_lb * pl.reciprocal(neg)          # 1/neg folded into weight (exact)
    scale = (1.0 / q) * inv_b                          # trace-time constant

    # Stack flow & rgb along sublanes so the pow (log/exp) pipeline and the
    # full-tile reductions run once over a single dense [2B, T] tile.
    stack_ref[0:B, :] = flow_ref[...].astype(jnp.float32)       # rows [0, B)  = flow
    stack_ref[B:2 * B, :] = rgb_ref[...].astype(jnp.float32)    # rows [B, 2B) = rgb
    lg2 = stack_ref[...]                               # [2B, T], values in (0, 1)

    # x ** q with x > 0 implemented as exp(q * log(x))  (EUP ops),
    # eps placed inside the pow exactly like the torch reference.
    pow_pos = jnp.exp(q * jnp.log(lg2 + 1e-07))        # (x + 1e-7) ** q
    pow_neg = jnp.exp(q * jnp.log(1.0 - lg2 + 1e-07))  # (1 - x + 1e-7) ** q

    def half_loss(lo, hi):
        # Static sublane slices stay within one (8,128) tile -> cheap vreg selects.
        t1 = jnp.sum(jnp.sum((1.0 - pow_pos[lo:hi, :]) * w_pos,
                             axis=1, keepdims=True), axis=0, keepdims=True)
        t2 = jnp.sum(jnp.sum((1.0 - pow_neg[lo:hi, :]) * w_neg,
                             axis=1, keepdims=True), axis=0, keepdims=True)
        return (t1 + t2) * scale                       # (1, 1)

    flow_loss = half_loss(0, B)
    rgb_loss = half_loss(B, 2 * B)

    # Consolidated (1, 3) output row: [base, flow, rgb], built with iota/where so
    # a single full-tile store writes all three values.
    lane = jax.lax.broadcasted_iota(jnp.int32, (1, 3), 1)
    row = jnp.where(lane == 0, base, jnp.where(lane == 1, flow_loss, rgb_loss))
    out_ref[...] = row


def total_loss(cas_top, _label, action_flow, action_rgb, cls_agnostic_gt, q=0.7):
    """JAX wrapper reproducing TotalLoss.forward; returns (cost, loss_dict)."""
    B, C = cas_top.shape
    T = action_flow.shape[-1]

    # Full-array blocks (grid of 1 step). The size-1 middle dim of the [B,1,T]
    # inputs is squeezed in the BlockSpec (None) so the kernel sees dense [B,T].
    spec_bc = pl.BlockSpec((B, C), lambda i: (0, 0))
    spec_bt = pl.BlockSpec((B, None, T), lambda i: (0, 0, 0))

    cost_est = pl.CostEstimate(
        flops=int(12 * B * C + 24 * B * T),
        transcendentals=int(B * C + B + 8 * B * T),
        bytes_accessed=int(4 * (2 * B * C + 3 * B * T) + 12),
    )

    losses = pl.pallas_call(
        functools.partial(_total_loss_kernel, float(q)),
        grid=(1,),
        out_shape=jax.ShapeDtypeStruct((1, 3), jnp.float32),
        in_specs=[spec_bc, spec_bc, spec_bt, spec_bt, spec_bt],
        out_specs=pl.BlockSpec((1, 3), lambda i: (0, 0)),
        scratch_shapes=[pltpu.VMEM((2 * B, T), jnp.float32)],
        compiler_params=pltpu.CompilerParams(dimension_semantics=("arbitrary",)),
        cost_estimate=cost_est,
    )(cas_top, _label, action_flow, action_rgb, cls_agnostic_gt)

    base = losses[0, 0]
    floss = losses[0, 1]
    rloss = losses[0, 2]
    cost = base + floss + rloss
    loss_dict = {'Loss/base': base, 'Loss/flow': floss, 'Loss/rgb': rloss}
    return cost, loss_dict


def _reference(cas_top, _label, action_flow, action_rgb, cls_agnostic_gt, q):
    """Pure-JAX transcription of the PyTorch TotalLoss for verification."""
    lab = _label / jnp.sum(_label, axis=1, keepdims=True) + 1e-10
    base = -jnp.mean(jnp.sum(lab * jax.nn.log_softmax(cas_top, axis=1), axis=1),
                     axis=0)

    def gce(lg, lb):
        pos = jnp.sum(lb, axis=1) + 1e-07
        neg = jnp.sum(1.0 - lb, axis=1) + 1e-07
        first = jnp.mean(
            jnp.sum((1.0 - (lg + 1e-07) ** q) / q * lb, axis=1) / pos)
        second = jnp.mean(
            jnp.sum((1.0 - (1.0 - lg + 1e-07) ** q) / q * (1.0 - lb), axis=1) / neg)
        return first + second

    f = gce(action_flow[:, 0, :], cls_agnostic_gt[:, 0, :])
    r = gce(action_rgb[:, 0, :], cls_agnostic_gt[:, 0, :])
    return base + f + r, {'Loss/base': base, 'Loss/flow': f, 'Loss/rgb': r}


if __name__ == "__main__":
    key = jax.random.PRNGKey(0)
    k1, k2, k3, k4, k5 = jax.random.split(key, 5)

    B, C, T = 2, 16, 16   # batch, num_classes, temporal length
    q = 0.7               # GeneralizedCE exponent (module __init__ arg)

    # Class logits and multi-hot video-level labels (at least one positive per row).
    cas_top = jax.random.normal(k1, (B, C), dtype=jnp.float32)
    label_bits = (jax.random.uniform(k2, (B, C)) > 0.7).astype(jnp.float32)
    _label = label_bits.at[:, 0].set(1.0)   # guarantee non-zero row sum

    # Class-agnostic actionness scores in (0, 1) and binary ground truth, [B, 1, T].
    action_flow = jax.nn.sigmoid(jax.random.normal(k3, (B, 1, T), dtype=jnp.float32))
    action_rgb = jax.nn.sigmoid(jax.random.normal(k4, (B, 1, T), dtype=jnp.float32))
    cls_agnostic_gt = (jax.random.uniform(k5, (B, 1, T)) > 0.5).astype(jnp.float32)

    cost, loss_dict = total_loss(cas_top, _label, action_flow, action_rgb,
                                 cls_agnostic_gt, q=q)
    jax.block_until_ready(cost)
    jax.block_until_ready(loss_dict)

    # Numerical sanity check against the pure-JAX reference of the torch module.
    ref_cost, ref_dict = _reference(cas_top, _label, action_flow, action_rgb,
                                    cls_agnostic_gt, q)
    ok = bool(jnp.allclose(cost, ref_cost, rtol=1e-4, atol=1e-5))
    for name in ref_dict:
        ok = ok and bool(jnp.allclose(loss_dict[name], ref_dict[name],
                                      rtol=1e-4, atol=1e-5))
    if not ok:
        raise AssertionError("Pallas TotalLoss mismatch vs reference")
    print("KERNEL_OK")
</pallas_src>

<mosaic_0001>
module attributes {stable_mosaic.version = 11 : i64} {
  func.func @_total_loss_kernel(%arg0: i32, %arg1: memref<2x16xf32, #tpu.memory_space<vmem>>, %arg2: memref<2x16xf32, #tpu.memory_space<vmem>>, %arg3: memref<2x1x16xf32, #tpu.memory_space<vmem>>, %arg4: memref<2x1x16xf32, #tpu.memory_space<vmem>>, %arg5: memref<2x1x16xf32, #tpu.memory_space<vmem>>, %arg6: memref<1x3xf32, #tpu.memory_space<vmem>>, %arg7: memref<4x16xf32, #tpu.memory_space<vmem>>) attributes {dimension_semantics = [#tpu.dimension_semantics<arbitrary>], iteration_bounds = array<i64: 1>, scalar_prefetch = 0 : i64, scratch_operands = 1 : i64, tpu.core_type = #tpu.core_type<tc>, window_params = [{pipeline_mode = #tpu.pipeline_mode<synchronous>, transform_indices = @transform_0, window_bounds = array<i64: 2, 16>}, {pipeline_mode = #tpu.pipeline_mode<synchronous>, transform_indices = @transform_1, window_bounds = array<i64: 2, 16>}, {pipeline_mode = #tpu.pipeline_mode<synchronous>, transform_indices = @transform_2, window_bounds = array<i64: 2, 1, 16>}, {pipeline_mode = #tpu.pipeline_mode<synchronous>, transform_indices = @transform_3, window_bounds = array<i64: 2, 1, 16>}, {pipeline_mode = #tpu.pipeline_mode<synchronous>, transform_indices = @transform_4, window_bounds = array<i64: 2, 1, 16>}, {pipeline_mode = #tpu.pipeline_mode<synchronous>, transform_indices = @transform_5, window_bounds = array<i64: 1, 3>}]} {
    %c0 = arith.constant 0 : index
    %c0_0 = arith.constant 0 : index
    %0 = vector.load %arg1[%c0, %c0_0] : memref<2x16xf32, #tpu.memory_space<vmem>>, vector<2x16xf32>
    %c0_1 = arith.constant 0 : index
    %c0_2 = arith.constant 0 : index
    %1 = vector.load %arg2[%c0_1, %c0_2] : memref<2x16xf32, #tpu.memory_space<vmem>>, vector<2x16xf32>
    %cst = arith.constant dense<0.000000e+00> : vector<2xf32>
    %2 = vector.multi_reduction <add>, %1, %cst [1] : vector<2x16xf32> to vector<2xf32>
    %3 = vector.shape_cast %2 : vector<2xf32> to vector<2x1xf32>
    %4 = tpu.reciprocal %3 : vector<2x1xf32> -> vector<2x1xf32>
    %5 = vector.broadcast %4 : vector<2x1xf32> to vector<2x16xf32>
    %6 = arith.mulf %1, %5 : vector<2x16xf32>
    %cst_3 = arith.constant 1.000000e-10 : f32
    %7 = vector.broadcast %cst_3 : f32 to vector<2x16xf32>
    %8 = arith.addf %6, %7 : vector<2x16xf32>
    %cst_4 = arith.constant dense<0xFF800000> : vector<2xf32>
    %9 = vector.multi_reduction <maximumf>, %0, %cst_4 [1] : vector<2x16xf32> to vector<2xf32>
    %10 = vector.shape_cast %9 : vector<2xf32> to vector<2x1xf32>
    %11 = vector.broadcast %10 : vector<2x1xf32> to vector<2x16xf32>
    %12 = arith.subf %0, %11 : vector<2x16xf32>
    %13 = math.exp %12 : vector<2x16xf32>
    %cst_5 = arith.constant dense<0.000000e+00> : vector<2xf32>
    %14 = vector.multi_reduction <add>, %13, %cst_5 [1] : vector<2x16xf32> to vector<2xf32>
    %15 = vector.shape_cast %14 : vector<2xf32> to vector<2x1xf32>
    %16 = math.log %15 : vector<2x1xf32>
    %17 = vector.broadcast %16 : vector<2x1xf32> to vector<2x16xf32>
    %18 = arith.subf %12, %17 : vector<2x16xf32>
    %19 = arith.mulf %8, %18 : vector<2x16xf32>
    %cst_6 = arith.constant dense<0.000000e+00> : vector<2xf32>
    %20 = vector.multi_reduction <add>, %19, %cst_6 [1] : vector<2x16xf32> to vector<2xf32>
    %21 = vector.shape_cast %20 : vector<2xf32> to vector<2x1xf32>
    %cst_7 = arith.constant dense<0.000000e+00> : vector<1xf32>
    %22 = vector.multi_reduction <add>, %21, %cst_7 [0] : vector<2x1xf32> to vector<1xf32>
    %23 = vector.shape_cast %22 : vector<1xf32> to vector<1x1xf32>
    %cst_8 = arith.constant -5.000000e-01 : f32
    %24 = vector.broadcast %cst_8 : f32 to vector<1x1xf32>
    %25 = arith.mulf %24, %23 : vector<1x1xf32>
    %c0_9 = arith.constant 0 : index
    %c0_10 = arith.constant 0 : index
    %c0_11 = arith.constant 0 : index
    %26 = vector.load %arg5[%c0_9, %c0_10, %c0_11] : memref<2x1x16xf32, #tpu.memory_space<vmem>>, vector<2x1x16xf32>
    %27 = vector.shape_cast %26 : vector<2x1x16xf32> to vector<2x16xf32>
    %cst_12 = arith.constant 1.000000e+00 : f32
    %28 = vector.broadcast %cst_12 : f32 to vector<2x16xf32>
    %29 = arith.subf %28, %27 : vector<2x16xf32>
    %cst_13 = arith.constant dense<0.000000e+00> : vector<2xf32>
    %30 = vector.multi_reduction <add>, %27, %cst_13 [1] : vector<2x16xf32> to vector<2xf32>
    %31 = vector.shape_cast %30 : vector<2xf32> to vector<2x1xf32>
    %cst_14 = arith.constant 1.000000e-07 : f32
    %32 = vector.broadcast %cst_14 : f32 to vector<2x1xf32>
    %33 = arith.addf %31, %32 : vector<2x1xf32>
    %cst_15 = arith.constant dense<0.000000e+00> : vector<2xf32>
    %34 = vector.multi_reduction <add>, %29, %cst_15 [1] : vector<2x16xf32> to vector<2xf32>
    %35 = vector.shape_cast %34 : vector<2xf32> to vector<2x1xf32>
    %cst_16 = arith.constant 1.000000e-07 : f32
    %36 = vector.broadcast %cst_16 : f32 to vector<2x1xf32>
    %37 = arith.addf %35, %36 : vector<2x1xf32>
    %38 = tpu.reciprocal %33 : vector<2x1xf32> -> vector<2x1xf32>
    %39 = vector.broadcast %38 : vector<2x1xf32> to vector<2x16xf32>
    %40 = arith.mulf %27, %39 : vector<2x16xf32>
    %41 = tpu.reciprocal %37 : vector<2x1xf32> -> vector<2x1xf32>
    %42 = vector.broadcast %41 : vector<2x1xf32> to vector<2x16xf32>
    %43 = arith.mulf %29, %42 : vector<2x16xf32>
    %c0_17 = arith.constant 0 : index
    %c0_18 = arith.constant 0 : index
    %c0_19 = arith.constant 0 : index
    %44 = vector.load %arg3[%c0_17, %c0_18, %c0_19] : memref<2x1x16xf32, #tpu.memory_space<vmem>>, vector<2x1x16xf32>
    %45 = vector.shape_cast %44 : vector<2x1x16xf32> to vector<2x16xf32>
    %c0_20 = arith.constant 0 : index
    %c0_21 = arith.constant 0 : index
    %46 = vector.load %arg7[%c0_20, %c0_21] : memref<4x16xf32, #tpu.memory_space<vmem>>, vector<2x16xf32>
    tpu.vector_store %arg7[%c0_20, %c0_21], %45 {strides = array<i32>} : memref<4x16xf32, #tpu.memory_space<vmem>>, vector<2x16xf32>,
    %c0_22 = arith.constant 0 : index
    %c0_23 = arith.constant 0 : index
    %c0_24 = arith.constant 0 : index
    %47 = vector.load %arg4[%c0_22, %c0_23, %c0_24] : memref<2x1x16xf32, #tpu.memory_space<vmem>>, vector<2x1x16xf32>
    %48 = vector.shape_cast %47 : vector<2x1x16xf32> to vector<2x16xf32>
    %c2 = arith.constant 2 : index
    %c0_25 = arith.constant 0 : index
    %49 = vector.load %arg7[%c2, %c0_25] : memref<4x16xf32, #tpu.memory_space<vmem>>, vector<2x16xf32>
    tpu.vector_store %arg7[%c2, %c0_25], %48 {strides = array<i32>} : memref<4x16xf32, #tpu.memory_space<vmem>>, vector<2x16xf32>,
    %c0_26 = arith.constant 0 : index
    %c0_27 = arith.constant 0 : index
    %50 = vector.load %arg7[%c0_26, %c0_27] : memref<4x16xf32, #tpu.memory_space<vmem>>, vector<4x16xf32>
    %cst_28 = arith.constant 1.000000e-07 : f32
    %51 = vector.broadcast %cst_28 : f32 to vector<4x16xf32>
    %52 = arith.addf %50, %51 : vector<4x16xf32>
    %53 = math.log %52 : vector<4x16xf32>
    %cst_29 = arith.constant 0.699999988 : f32
    %54 = vector.broadcast %cst_29 : f32 to vector<4x16xf32>
    %55 = arith.mulf %54, %53 : vector<4x16xf32>
    %56 = math.exp %55 : vector<4x16xf32>
    %cst_30 = arith.constant 1.000000e+00 : f32
    %57 = vector.broadcast %cst_30 : f32 to vector<4x16xf32>
    %58 = arith.subf %57, %50 : vector<4x16xf32>
    %cst_31 = arith.constant 1.000000e-07 : f32
    %59 = vector.broadcast %cst_31 : f32 to vector<4x16xf32>
    %60 = arith.addf %58, %59 : vector<4x16xf32>
    %61 = math.log %60 : vector<4x16xf32>
    %cst_32 = arith.constant 0.699999988 : f32
    %62 = vector.broadcast %cst_32 : f32 to vector<4x16xf32>
    %63 = arith.mulf %62, %61 : vector<4x16xf32>
    %64 = math.exp %63 : vector<4x16xf32>
    %65 = vector.extract_strided_slice %56 {offsets = [0, 0], sizes = [2, 16], strides = [1, 1]} : vector<4x16xf32> to vector<2x16xf32>
    %cst_33 = arith.constant 1.000000e+00 : f32
    %66 = vector.broadcast %cst_33 : f32 to vector<2x16xf32>
    %67 = arith.subf %66, %65 : vector<2x16xf32>
    %68 = arith.mulf %67, %40 : vector<2x16xf32>
    %cst_34 = arith.constant dense<0.000000e+00> : vector<2xf32>
    %69 = vector.multi_reduction <add>, %68, %cst_34 [1] : vector<2x16xf32> to vector<2xf32>
    %70 = vector.shape_cast %69 : vector<2xf32> to vector<2x1xf32>
    %cst_35 = arith.constant dense<0.000000e+00> : vector<1xf32>
    %71 = vector.multi_reduction <add>, %70, %cst_35 [0] : vector<2x1xf32> to vector<1xf32>
    %72 = vector.shape_cast %71 : vector<1xf32> to vector<1x1xf32>
    %73 = vector.extract_strided_slice %64 {offsets = [0, 0], sizes = [2, 16], strides = [1, 1]} : vector<4x16xf32> to vector<2x16xf32>
    %cst_36 = arith.constant 1.000000e+00 : f32
    %74 = vector.broadcast %cst_36 : f32 to vector<2x16xf32>
    %75 = arith.subf %74, %73 : vector<2x16xf32>
    %76 = arith.mulf %75, %43 : vector<2x16xf32>
    %cst_37 = arith.constant dense<0.000000e+00> : vector<2xf32>
    %77 = vector.multi_reduction <add>, %76, %cst_37 [1] : vector<2x16xf32> to vector<2xf32>
    %78 = vector.shape_cast %77 : vector<2xf32> to vector<2x1xf32>
    %cst_38 = arith.constant dense<0.000000e+00> : vector<1xf32>
    %79 = vector.multi_reduction <add>, %78, %cst_38 [0] : vector<2x1xf32> to vector<1xf32>
    %80 = vector.shape_cast %79 : vector<1xf32> to vector<1x1xf32>
    %81 = arith.addf %72, %80 : vector<1x1xf32>
    %cst_39 = arith.constant 0.714285731 : f32
    %82 = vector.broadcast %cst_39 : f32 to vector<1x1xf32>
    %83 = arith.mulf %81, %82 : vector<1x1xf32>
    %84 = vector.extract_strided_slice %56 {offsets = [2, 0], sizes = [2, 16], strides = [1, 1]} : vector<4x16xf32> to vector<2x16xf32>
    %cst_40 = arith.constant 1.000000e+00 : f32
    %85 = vector.broadcast %cst_40 : f32 to vector<2x16xf32>
    %86 = arith.subf %85, %84 : vector<2x16xf32>
    %87 = arith.mulf %86, %40 : vector<2x16xf32>
    %cst_41 = arith.constant dense<0.000000e+00> : vector<2xf32>
    %88 = vector.multi_reduction <add>, %87, %cst_41 [1] : vector<2x16xf32> to vector<2xf32>
    %89 = vector.shape_cast %88 : vector<2xf32> to vector<2x1xf32>
    %cst_42 = arith.constant dense<0.000000e+00> : vector<1xf32>
    %90 = vector.multi_reduction <add>, %89, %cst_42 [0] : vector<2x1xf32> to vector<1xf32>
    %91 = vector.shape_cast %90 : vector<1xf32> to vector<1x1xf32>
    %92 = vector.extract_strided_slice %64 {offsets = [2, 0], sizes = [2, 16], strides = [1, 1]} : vector<4x16xf32> to vector<2x16xf32>
    %cst_43 = arith.constant 1.000000e+00 : f32
    %93 = vector.broadcast %cst_43 : f32 to vector<2x16xf32>
    %94 = arith.subf %93, %92 : vector<2x16xf32>
    %95 = arith.mulf %94, %43 : vector<2x16xf32>
    %cst_44 = arith.constant dense<0.000000e+00> : vector<2xf32>
    %96 = vector.multi_reduction <add>, %95, %cst_44 [1] : vector<2x16xf32> to vector<2xf32>
    %97 = vector.shape_cast %96 : vector<2xf32> to vector<2x1xf32>
    %cst_45 = arith.constant dense<0.000000e+00> : vector<1xf32>
    %98 = vector.multi_reduction <add>, %97, %cst_45 [0] : vector<2x1xf32> to vector<1xf32>
    %99 = vector.shape_cast %98 : vector<1xf32> to vector<1x1xf32>
    %100 = arith.addf %91, %99 : vector<1x1xf32>
    %cst_46 = arith.constant 0.714285731 : f32
    %101 = vector.broadcast %cst_46 : f32 to vector<1x1xf32>
    %102 = arith.mulf %100, %101 : vector<1x1xf32>
    %103 = tpu.iota {dimensions = array<i32: 1>} : vector<1x3xi32>
    %c0_i32 = arith.constant 0 : i32
    %104 = vector.broadcast %c0_i32 : i32 to vector<1x3xi32>
    %105 = arith.cmpi eq, %103, %104 : vector<1x3xi32>
    %c1_i32 = arith.constant 1 : i32
    %106 = vector.broadcast %c1_i32 : i32 to vector<1x3xi32>
    %107 = arith.cmpi eq, %103, %106 : vector<1x3xi32>
    %108 = vector.shape_cast %83 : vector<1x1xf32> to vector<1x1xf32>
    %109 = vector.broadcast %108 : vector<1x1xf32> to vector<1x3xf32>
    %110 = vector.shape_cast %102 : vector<1x1xf32> to vector<1x1xf32>
    %111 = vector.broadcast %110 : vector<1x1xf32> to vector<1x3xf32>
    %112 = arith.select %107, %109, %111 : vector<1x3xi1>, vector<1x3xf32>
    %113 = vector.shape_cast %25 : vector<1x1xf32> to vector<1x1xf32>
    %114 = vector.broadcast %113 : vector<1x1xf32> to vector<1x3xf32>
    %115 = arith.select %105, %114, %112 : vector<1x3xi1>, vector<1x3xf32>
    %c0_47 = arith.constant 0 : index
    %c0_48 = arith.constant 0 : index
    %116 = vector.load %arg6[%c0_47, %c0_48] : memref<1x3xf32, #tpu.memory_space<vmem>>, vector<1x3xf32>
    tpu.vector_store %arg6[%c0_47, %c0_48], %115 {strides = array<i32>} : memref<1x3xf32, #tpu.memory_space<vmem>>, vector<1x3xf32>,
    return
  }
  func.func @transform_0(%arg0: i32) -> (i32, i32) {
    %c0_i32 = arith.constant 0 : i32
    %c0_i32_0 = arith.constant 0 : i32
    %c0_i32_1 = arith.constant 0 : i32
    return %c0_i32, %c0_i32_0 : i32, i32
  }
  func.func @transform_1(%arg0: i32) -> (i32, i32) {
    %c0_i32 = arith.constant 0 : i32
    %c0_i32_0 = arith.constant 0 : i32
    %c0_i32_1 = arith.constant 0 : i32
    return %c0_i32, %c0_i32_0 : i32, i32
  }
  func.func @transform_2(%arg0: i32) -> (i32, i32, i32) {
    %c0_i32 = arith.constant 0 : i32
    %c0_i32_0 = arith.constant 0 : i32
    %c0_i32_1 = arith.constant 0 : i32
    %c0_i32_2 = arith.constant 0 : i32
    return %c0_i32, %c0_i32_0, %c0_i32_1 : i32, i32, i32
  }
  func.func @transform_3(%arg0: i32) -> (i32, i32, i32) {
    %c0_i32 = arith.constant 0 : i32
    %c0_i32_0 = arith.constant 0 : i32
    %c0_i32_1 = arith.constant 0 : i32
    %c0_i32_2 = arith.constant 0 : i32
    return %c0_i32, %c0_i32_0, %c0_i32_1 : i32, i32, i32
  }
  func.func @transform_4(%arg0: i32) -> (i32, i32, i32) {
    %c0_i32 = arith.constant 0 : i32
    %c0_i32_0 = arith.constant 0 : i32
    %c0_i32_1 = arith.constant 0 : i32
    %c0_i32_2 = arith.constant 0 : i32
    return %c0_i32, %c0_i32_0, %c0_i32_1 : i32, i32, i32
  }
  func.func @transform_5(%arg0: i32) -> (i32, i32) {
    %c0_i32 = arith.constant 0 : i32
    %c0_i32_0 = arith.constant 0 : i32
    %c0_i32_1 = arith.constant 0 : i32
    return %c0_i32, %c0_i32_0 : i32, i32
  }
}

</mosaic_0001>

<bundles_post_ra>
// kernel: tpu_custom_call.1
= control target key start
LH: loop header
LB: loop body
LE: loop exit
PB: predicated region body
PF: predicated region fallthrough
CT: control target
= control target key end

     0   :  { %10 = vsyncpa [#allocation4], 0  ;;  %s591_s0 = inlined_call_operand.hbm [shape: f32[2,16], index: 0, kind: input, shape index: {}]   ;;  %s592_s1 = inlined_call_operand.hbm [shape: f32[2,16], index: 1, kind: input, shape index: {}]   ;;  %s593_s2 = inlined_call_operand.hbm [shape: f32[2,1,16], index: 2, kind: input, shape index: {}]   ;;  %s594_s3 = inlined_call_operand.vmem [shape: f32[2,1,16], index: 3, kind: input, shape index: {}]   ;;  %s595_s4 = inlined_call_operand.hbm [shape: f32[2,1,16], index: 4, kind: input, shape index: {}]   ;;  %s596_s5 = inlined_call_operand.hbm [shape: f32[1,3], index: 5, kind: output, shape index: {}]  }
   0x1   :  { %11 = vsyncpa [#allocation7], 0 }
   0x2   :  { %12 = vsyncpa [#allocation10], 0  ;;  %s30_s20 = sshll.u32 %s592_s1, 4  ;;  %s31_s20 = int_to_ptr.hbm [resolvable:$true] %s30_s20 }
   0x3   :  { %13 = vsyncpa [#allocation5], 0  ;;  %s492_s21 = smov [#allocation6]   ;;  %s19_s25 = sshll.u32 %s591_s0, 4  ;;  %s20_s25 = int_to_ptr.hbm [resolvable:$true] %s19_s25 }
   0x4   :  { %s32_s22 = sshll.u32 %s492_s21, 4  ;;  %s493_s26 = smov [#allocation3]   ;;  %s33_s22 = int_to_ptr.vmem [resolvable:$true] %s32_s22 }
   0x5   :  { %35 = dma.hbm_to_vmem [thread:$0]  %s31_s20, 32, %s33_s22, [#allocation7]  }
   0x6   :  { %s21_s27 = sshll.u32 %s493_s26, 4  ;;  %s40_s30 = sshll.u32 %s593_s2, 4  ;;  %s22_s27 = int_to_ptr.vmem [resolvable:$true] %s21_s27  ;;  %s41_s30 = int_to_ptr.hbm [resolvable:$true] %s40_s30 }
   0x7   :  { %24 = dma.hbm_to_vmem [thread:$0]  %s20_s25, 32, %s22_s27, [#allocation4]  }
   0x8   :  { %s494_s1 = smov [#allocation8]   ;;  %s55_s9 = sshll.u32 %s595_s4, 4  ;;  %s56_s9 = int_to_ptr.hbm [resolvable:$true] %s55_s9 }
   0x9   :  { %s42_s6 = sshll.u32 %s494_s1, 4  ;;  %s495_s10 = smov 16   ;;  %s43_s6 = int_to_ptr.vmem [resolvable:$true] %s42_s6 }
   0xa   :  { %s496_s0 = smov 1   ;;  %s497_s11 = smov [#allocation9]  }
   0xb   :  { %48 = dma.hbm_to_vmem [thread:$0]  %s41_s30, 32, %s43_s6, [#allocation7], %s495_s10, %s495_s10, %s496_s0  }
   0xc   :  { %s57_s12 = sshll.u32 %s497_s11, 4  ;;  %s58_s12 = int_to_ptr.vmem [resolvable:$true] %s57_s12 }
   0xd   :  { %63 = dma.hbm_to_vmem [thread:$0]  %s56_s9, 32, %s58_s12, [#allocation10], %s495_s10, %s495_s10, %s496_s0  }
   0xe   :  { %484 = dma.done.wait [#allocation4], 32  }
   0xf   :  { %485 = vsyncadd [#allocation4], 4294967264 }
  0x10   :  { %486 = dma.done.wait [#allocation7], 64  }
  0x11   :  { %487 = vsyncadd [#allocation7], 4294967232 }
  0x12   :  { %488 = dma.done.wait [#allocation10], 32  }
  0x13   :  { %489 = vsyncadd [#allocation10], 4294967264  ;;  %vm82_vm0 = vcmask 123904   ;;  %v80_v0 = vld [vmem:[#allocation3] sm:$0x3]  ;;  %vm276_vm9 = vcmask 125954  }
  0x14   :  { %v541_v1 = vld [vmem:[#allocation9] sm:$0x1]  ;;  %v543_v2 = vld [vmem:[#allocation9 + $0x1] sm:$0x1]  ;;  %v102_v3 = vsel %vm82_vm0, %v80_v0, -inf  ;;  %vm118_vm14 = vcmask 1041408  }
  0x15   :  { %133 = vst [vmem:[#allocation1] ss:$9 sm:$0xff] %v541_v1  ;;  %103 = vmax.xlane.f32.xlu0 %v102_v3  ;;  %v129_v4 = vsub.f32 1.0, %v541_v1  ;;  %v130_v5 = vsub.f32 1.0, %v543_v2  ;;  %v556_v10 = vld [vmem:[#allocation6] sm:$0x3] }
  0x16   :  { %135 = vst [vmem:[#allocation1 + $0x1] ss:$9 sm:$0xff] %v543_v2  ;;  %v83_v11 = vsel %vm82_vm0, %v556_v10, 0.0  ;;  %v195_v12 = vld [vmem:[#allocation8] sm:$0x1]  ;;  %s327_s18 = sshll.u32 %s596_s5, 4  ;;  %s328_s18 = int_to_ptr.hbm [resolvable:$true] %s327_s18 }
  0x17   :  { %v196_v13 = vld [vmem:[#allocation8 + $0x1] sm:$0x1]  ;;  %v205_v14 = vld [vmem:[%s594_s3] sm:$0x1]  ;;  %v206_v15 = vld [vmem:[%s594_s3 + $0x1] sm:$0x1] }
  0x18   :  { %s498_s3 = smov [#allocation11]  }
  0x19   :  { %s325_s15 = sshll.u32 %s498_s3, 4  ;;  %s326_s15 = int_to_ptr.vmem [resolvable:$true] %s325_s15 }
  0x1d   :  { %v136_v6 = vld [vmem:[#allocation1] sm:$0xff] }
  0x1e   :  { %v138_v7 = vsel %vm82_vm0, %v136_v6, 0.0  ;;  %144 = vst [vmem:[#allocation1] ss:$9 sm:$0xff] %v129_v4 }
  0x1f   :  { %139 = vadd.xlane.f32.xlu0 %v138_v7  ;;  %146 = vst [vmem:[#allocation1 + $0x1] ss:$9 sm:$0xff] %v130_v5 }
  0x26   :  { %v147_v8 = vld [vmem:[#allocation1] sm:$0xff] }
  0x27   :  { %v149_v9 = vsel %vm82_vm0, %v147_v8, 0.0  ;;  %199 = vst [vmem:[#allocation1] ss:$9 sm:$0xff] %v195_v12 }
  0x28   :  { %150 = vadd.xlane.f32.xlu1 %v149_v9  ;;  %201 = vst [vmem:[#allocation1 + $0x1] ss:$9 sm:$0xff] %v196_v13 }
  0x2f   :  { %v202_v16 = vld [vmem:[#allocation1] sm:$0xff] }
  0x30   :  { %84 = vadd.xlane.f32.xlu1 %v83_v11  ;;  %209 = vst [vmem:[#allocation1] ss:$9 sm:$0xff] %v205_v14 }
  0x31   :  { %211 = vst [vmem:[#allocation1 + $0x1] ss:$9 sm:$0xff] %v206_v15 }
  0x32   :  { %204 = vst.msk [vmem:[#allocation2] sm:$0x3] %vm82_vm0, %v202_v16 }
  0x38   :  { %v212_v17 = vld [vmem:[#allocation1] sm:$0xff] }
  0x39   :  { %214 = vst.msk [vmem:[#allocation2 + $0x2] sm:$0x3] %vm82_vm0, %v212_v17 }
  0x40   :  { %v215_v21 = vld [vmem:[#allocation2] sm:$0xf] }
  0x41   :  { %v216_v23 = vadd.f32 1e-07, %v215_v21  ;;  %v222_v48 = vsub.f32 1.0, %v215_v21 }
  0x43   :  { %v223_v53 = vadd.f32 1e-07, %v222_v48 }
  0x88   :  { %v104_v18 = vpop.xlane.xlu0 %103 }
  0x89   :  { %v568_v19 = vsub.f32 %v80_v0, %v104_v18 }
  0x8b   :  { %v106_v20 = vmul.f32 1.442695, %v568_v19 }
  0x8d   :  { %346 = vpow2.f32 %v106_v20 }
  0x8e   :  { %348 = vlog2.f32 %v216_v23 }
  0x92   :  { %v140_v22 = vpop.xlane.xlu0 %139 }
  0x93   :  { %v141_v24 = vadd.f32 1e-07, %v140_v22  ;;  %v347_v25 = vpop.eup %346 }
  0x94   :  { %v108_v26 = vsel %vm82_vm0, %v347_v25, 0.0  ;;  %v349_v27 = vpop.eup %348 }
  0x95   :  { %350 = vrcp.f32 %v141_v24  ;;  %109 = vadd.xlane.f32.xlu2 %v108_v26  ;;  %v218_v32 = vmul.f32 0.6931472, %v349_v27  ;;  %vm158_vm1 = vweird.f32 %v141_v24  ;;  %v164_v33 = vand.u32 2147483648, %v141_v24 }
  0x96   :  { %v162_v35 = vand.u32 2147483647, %v141_v24 }
  0x97   :  { %v219_v37 = vmul.f32 0.7, %v218_v32  ;;  %v165_v38 = vor.u32 1.1754944e-38, %v164_v33 }
  0x98   :  { %vm163_vm4 = vcmp.eq.f32.partialorder %v162_v35, 8.507059e+37 }
  0x99   :  { %v220_v42 = vmul.f32 1.442695, %v219_v37 }
  0x9b   :  { %v351_v28 = vpop.eup %350  ;;  %v151_v29 = vpop.xlane.xlu1 %150 }
  0x9c   :  { %v154_v30 = vmul.f32 %v351_v28, %v141_v24  ;;  %v152_v31 = vadd.f32 1e-07, %v151_v29  ;;  %vm159_vm2 = vweird.f32 %v351_v28 }
  0x9d   :  { %vm160_vm3 = vmor %vm158_vm1, %vm159_vm2  ;;  %vm318_vm1 = vcmask 16384  }
  0x9e   :  { %v155_v34 = vsub.f32 1.0, %v154_v30  ;;  %352 = vrcp.f32 %v152_v31  ;;  %v185_v47 = vand.u32 2147483648, %v152_v31  ;;  %vm179_vm5 = vweird.f32 %v152_v31 }
  0x9f   :  { %v183_v50 = vand.u32 2147483647, %v152_v31  ;;  %354 = vpow2.f32 %v220_v42 }
  0xa0   :  { %v156_v36 = vmul.f32 %v351_v28, %v155_v34  ;;  %v186_v55 = vor.u32 1.1754944e-38, %v185_v47  ;;  %356 = vlog2.f32 %v223_v53 }
  0xa1   :  { %vm184_vm8 = vcmp.eq.f32.partialorder %v183_v50, 8.507059e+37 }
  0xa2   :  { %v157_v39 = vadd.f32 %v351_v28, %v156_v36 }
  0xa3   :  { %v85_v21 = vpop.xlane.xlu1 %84 }
  0xa4   :  { %v353_v40 = vpop.eup %352  ;;  %v161_v41 = vsel %vm160_vm3, %v351_v28, %v157_v39  ;;  %vm91_vm10 = vweird.f32 %v85_v21  ;;  %v97_v26 = vand.u32 2147483648, %v85_v21  ;;  %v95_v27 = vand.u32 2147483647, %v85_v21 }
  0xa5   :  { %v166_v43 = vsel %vm163_vm4, %v165_v38, %v161_v41  ;;  %v175_v44 = vmul.f32 %v353_v40, %v152_v31  ;;  %vm180_vm6 = vweird.f32 %v353_v40  ;;  %v355_v58 = vpop.eup %354 }
  0xa6   :  { %v168_v45 = vperm.slane %v166_v43, 0  ;;  %v169_v46 = vperm.slane %v166_v43, 1  ;;  %vm181_vm7 = vmor %vm179_vm5, %vm180_vm6  ;;  %v357_v62 = vpop.eup %356  ;;  %v229_v3 = vsub.f32 1.0, %v355_v58  ;;  %v98_v29 = vor.u32 1.1754944e-38, %v97_v26 }
  0xa7   :  { %v176_v49 = vsub.f32 1.0, %v175_v44  ;;  %v225_v7 = vmul.f32 0.6931472, %v357_v62  ;;  %vm96_vm13 = vcmp.eq.f32.partialorder %v95_v27, 8.507059e+37 }
  0xa8   :  { %v172_v51 = vmul.f32 %v168_v45, %v541_v1  ;;  %v173_v52 = vmul.f32 %v169_v46, %v543_v2 }
  0xa9   :  { %v177_v54 = vmul.f32 %v353_v40, %v176_v49  ;;  %v226_v11 = vmul.f32 0.7, %v225_v7 }
  0xaa   :  { %232 = vst [vmem:[#allocation1] ss:$9 sm:$0xff] %v172_v51 }
  0xab   :  { %234 = vst [vmem:[#allocation1 + $0x1] ss:$9 sm:$0xff] %v173_v52  ;;  %v178_v56 = vadd.f32 %v353_v40, %v177_v54  ;;  %v227_v12 = vmul.f32 1.442695, %v226_v11 }
  0xad   :  { %v182_v57 = vsel %vm181_vm7, %v353_v40, %v178_v56  ;;  %358 = vpow2.f32 %v227_v12 }
  0xae   :  { %v187_v59 = vsel %vm184_vm8, %v186_v55, %v182_v57  ;;  %360 = vrcp.f32 %v85_v21 }
  0xaf   :  { %v189_v60 = vperm.slane %v187_v59, 0  ;;  %v190_v61 = vperm.slane %v187_v59, 1 }
  0xb1   :  { %v193_v63 = vmul.f32 %v189_v60, %v129_v4  ;;  %v194_v0 = vmul.f32 %v190_v61, %v130_v5 }
  0xb2   :  { %v235_v6 = vld [vmem:[#allocation1] sm:$0xff] }
  0xb3   :  { %251 = vst [vmem:[#allocation1] ss:$9 sm:$0xff] %v193_v63  ;;  %v237_v8 = vmul.f32 %v235_v6, %v229_v3  ;;  %v359_v1 = vpop.eup %358 }
  0xb4   :  { %253 = vst [vmem:[#allocation1 + $0x1] ss:$9 sm:$0xff] %v194_v0  ;;  %v248_v14 = vsub.f32 1.0, %v359_v1  ;;  %v361_v22 = vpop.eup %360 }
  0xb5   :  { %v238_v9 = vsel %vm82_vm0, %v237_v8, 0.0  ;;  %v87_v23 = vmul.f32 %v361_v22, %v85_v21  ;;  %vm92_vm11 = vweird.f32 %v361_v22 }
  0xb6   :  { %239 = vadd.xlane.f32.xlu1 %v238_v9  ;;  %vm93_vm12 = vmor %vm91_vm10, %vm92_vm11 }
  0xb7   :  { %v88_v24 = vsub.f32 1.0, %v87_v23 }
  0xb9   :  { %v89_v25 = vmul.f32 %v361_v22, %v88_v24 }
  0xbb   :  { %v254_v13 = vld [vmem:[#allocation1] sm:$0xff]  ;;  %v90_v28 = vadd.f32 %v361_v22, %v89_v25 }
  0xbc   :  { %270 = vst [vmem:[#allocation1 + $0x2] ss:$9 sm:$0xff] %v172_v51  ;;  %v256_v15 = vmul.f32 %v254_v13, %v248_v14 }
  0xbd   :  { %272 = vst [vmem:[#allocation1 + $0x3] ss:$9 sm:$0xff] %v173_v52  ;;  %v94_v31 = vsel %vm93_vm12, %v361_v22, %v90_v28 }
  0xbe   :  { %v257_v17 = vsel %vm82_vm0, %v256_v15, 0.0  ;;  %v99_v32 = vsel %vm96_vm13, %v98_v29, %v94_v31 }
  0xbf   :  { %v100_v33 = vmul.f32 %v99_v32, %v556_v10 }
  0xc1   :  { %v101_v37 = vadd.f32 1e-10, %v100_v33 }
  0xc4   :  { %v273_v4 = vld [vmem:[#allocation1] sm:$0xff] }
  0xc5   :  { %v275_v2 = vmul.f32 %v273_v4, %v229_v3  ;;  %291 = vst [vmem:[#allocation1 + $0x2] ss:$9 sm:$0xff] %v193_v63 }
  0xc6   :  { %293 = vst [vmem:[#allocation1 + $0x3] ss:$9 sm:$0xff] %v194_v0 }
  0xc7   :  { %v277_v5 = vsel %vm276_vm9, %v275_v2, 0.0 }
  0xc8   :  { %278 = vadd.xlane.f32.xlu2 %v277_v5  ;;  %v312_v5 = vlaneseq }
  0xcd   :  { %v294_v16 = vld [vmem:[#allocation1] sm:$0xff] }
  0xce   :  { %v296_v18 = vmul.f32 %v294_v16, %v248_v14 }
  0xd0   :  { %v297_v20 = vsel %vm276_vm9, %v296_v18, 0.0  ;;  %258 = vadd.xlane.f32.xlu2 %v257_v17  ;;  %v313_v18 = vand.u32 127, %v312_v5 }
  0xd1   :  { %298 = vadd.xlane.f32.xlu0 %v297_v20 }
  0xd2   :  { %vm315_vm15 = vcmp.eq.s32.totalorder %v313_v18, 1 }
 0x108   :  { %v110_v30 = vpop.xlane.xlu2 %109 }
 0x109   :  { %362 = vlog2.f32 %v110_v30 }
 0x10f   :  { %v363_v34 = vpop.eup %362 }
 0x110   :  { %v112_v35 = vmul.f32 0.6931472, %v363_v34 }
 0x112   :  { %v113_v36 = vsub.f32 %v568_v19, %v112_v35 }
 0x114   :  { %v114_v38 = vmul.f32 %v113_v36, %v101_v37 }
 0x116   :  { %v115_v39 = vsel %vm82_vm0, %v114_v38, 0.0  ;;  %vm314_vm0 = vcmp.eq.s32.totalorder %v313_v18, 0 }
 0x117   :  { %116 = vadd.xlane.f32.xlu0 %v115_v39 }
 0x129   :  { %v240_v45 = vpop.xlane.xlu1 %239 }
 0x12a   :  { %v241_v19 = vsel %vm118_vm14, %v240_v45, 0.0 }
 0x12b   :  { %v242_v51 = vrot.slane %v241_v19, 4 }
 0x12d   :  { %v243_v55 = vadd.f32 %v242_v51, %v241_v19 }
 0x12f   :  { %v244_v59 = vrot.slane %v243_v55, 2 }
 0x131   :  { %v245_v63 = vadd.f32 %v244_v59, %v243_v55 }
 0x133   :  { %v246_v7 = vrot.slane %v245_v63, 1 }
 0x135   :  { %v247_v4 = vadd.f32 %v246_v7, %v245_v63 }
 0x13b   :  { %v279_v40 = vpop.xlane.xlu2 %278 }
 0x13c   :  { %v281_v42 = vrot.slane %v279_v40, 2 }
 0x13e   :  { %v283_v46 = vsel %vm118_vm14, %v281_v42, 0.0 }
 0x13f   :  { %v284_v48 = vrot.slane %v283_v46, 4 }
 0x141   :  { %v285_v52 = vadd.f32 %v284_v48, %v283_v46 }
 0x143   :  { %v259_v44 = vpop.xlane.xlu2 %258  ;;  %v286_v56 = vrot.slane %v285_v52, 2 }
 0x144   :  { %v299_v41 = vpop.xlane.xlu0 %298  ;;  %v260_v47 = vsel %vm118_vm14, %v259_v44, 0.0 }
 0x145   :  { %v301_v43 = vrot.slane %v299_v41, 2  ;;  %v261_v50 = vrot.slane %v260_v47, 4  ;;  %v287_v60 = vadd.f32 %v286_v56, %v285_v52 }
 0x147   :  { %v303_v10 = vsel %vm118_vm14, %v301_v43, 0.0  ;;  %v262_v54 = vadd.f32 %v261_v50, %v260_v47  ;;  %v288_v0 = vrot.slane %v287_v60, 1 }
 0x148   :  { %v304_v49 = vrot.slane %v303_v10, 4 }
 0x149   :  { %v263_v58 = vrot.slane %v262_v54, 2  ;;  %v289_v12 = vadd.f32 %v288_v0, %v287_v60 }
 0x14a   :  { %v305_v53 = vadd.f32 %v304_v49, %v303_v10 }
 0x14b   :  { %v264_v62 = vadd.f32 %v263_v58, %v262_v54 }
 0x14c   :  { %v306_v57 = vrot.slane %v305_v53, 2 }
 0x14d   :  { %v265_v6 = vrot.slane %v264_v62, 1 }
 0x14e   :  { %v307_v61 = vadd.f32 %v306_v57, %v305_v53 }
 0x14f   :  { %v266_v1 = vadd.f32 %v265_v6, %v264_v62 }
 0x150   :  { %v308_v3 = vrot.slane %v307_v61, 1 }
 0x151   :  { %v267_v16 = vadd.f32 %v266_v1, %v247_v4 }
 0x152   :  { %v309_v13 = vadd.f32 %v308_v3, %v307_v61 }
 0x153   :  { %v268_v22 = vmul.f32 0.71428573, %v267_v16 }
 0x154   :  { %v310_v15 = vadd.f32 %v309_v13, %v289_v12 }
 0x156   :  { %v311_v21 = vmul.f32 0.71428573, %v310_v15 }
 0x158   :  { %v316_v25 = vsel %vm315_vm15, %v268_v22, %v311_v21 }
 0x18a   :  { %v117_v8 = vpop.xlane.xlu0 %116 }
 0x18b   :  { %v119_v9 = vsel %vm118_vm14, %v117_v8, 0.0 }
 0x18c   :  { %v120_v11 = vrot.slane %v119_v9, 4 }
 0x18e   :  { %v121_v2 = vadd.f32 %v120_v11, %v119_v9 }
 0x190   :  { %v122_v14 = vrot.slane %v121_v2, 2 }
 0x192   :  { %v123_v17 = vadd.f32 %v122_v14, %v121_v2 }
 0x194   :  { %v124_v20 = vrot.slane %v123_v17, 1 }
 0x196   :  { %v125_v23 = vadd.f32 %v124_v20, %v123_v17 }
 0x198   :  { %v126_v24 = vmul.f32 -0.5, %v125_v23 }
 0x19a   :  { %v317_v26 = vsel %vm314_vm0, %v126_v24, %v316_v25 }
 0x19b   :  { %319 = vst.msk [vmem:[#allocation11] sm:$0x1] %vm318_vm1, %v317_v26 }
 0x19c   :  { %330 = dma.vmem_to_hbm [thread:$0]  %s326_s15, 16, %s328_s18, [#allocation5]  }
 0x19d   :  { %490 = dma.done.wait [#allocation5], 16  }
 0x19e   :  { %491 = vsyncadd [#allocation5], 4294967280 }
 0x19f   :  { %335 = vsyncpa [#allocation4], 1 }
 0x1a0   :  { %336 = vsyncpa [#allocation7], 1 }
 0x1a1   :  { %337 = vsyncpa [#allocation10], 1 }
 0x1a2   :  { %338 = vsyncpa [#allocation5], 1 }

</bundles_post_ra>
